<compile_context>
chip_gen: v6e
topology: v6e:2x2x1
jax: 0.10.0
libtpu: 0.0.40
codegen_flags: <defaults>
</compile_context>

<pallas_src>
import functools

import jax
import jax.numpy as jnp
import numpy as np
from jax import lax
from jax.experimental import pallas as pl
from jax.experimental.pallas import tpu as pltpu


# 3x3 taps are indexed t = dh*3 + dw.  Tap 4 is the centre (no roll, no mask).
# Off-centre taps are grouped in pairs -> K = 2*C per matmul (fills the 256-deep
# v6e/v7x MXU at C=128).  For v5e's 128-deep MXU, singleton groups are equivalent.
_TAP_PAIRS = ((0, 1), (2, 3), (5, 6), (7, 8))
_CENTER_TAP = 4


# ----------------------------- Pallas kernel ---------------------------------

def _conv3x3_grouped(x, wp_ref, wc_ref, bn_shift, masks, width, hw):
    """3x3 'same' conv on a lane-flattened (C, HW) image via tap-pair matmuls.

    x:        (C, HW)      f32  -- image, spatial dims flattened into lanes.
    wp_ref:   (4, C, 2*C)  bf16 -- folded weights for the 4 off-centre tap pairs.
    wc_ref:   (C, C)       bf16 -- folded weight for the centre tap.
    bn_shift: (C, 1)       f32  -- folded BN shift (+ conv bias).
    masks:    (8, HW)      f32  -- {0,1} boundary masks for the off-centre taps
                                   (row order follows _TAP_PAIRS flattened).
    Returns (C, HW) f32.
    """
    def tap(t, mask_row):
        dh, dw = divmod(t, 3)
        d = (dh - 1) * width + (dw - 1)               # flat offset of tap (dh, dw)
        shifted = pltpu.roll(x, shift=(-d) % hw, axis=1)   # shifted[p] = x[p + d]
        return shifted * masks[mask_row:mask_row + 1, :]

    # Centre tap: K = C matmul straight off x (always valid -> no roll / mask).
    acc = jnp.dot(wc_ref[...], x.astype(jnp.bfloat16),
                  preferred_element_type=jnp.float32)

    # Off-centre taps two at a time: K = 2*C matmuls accumulated in f32.
    mrow = 0
    for g, (t0, t1) in enumerate(_TAP_PAIRS):
        patch = jnp.concatenate([tap(t0, mrow), tap(t1, mrow + 1)], axis=0)
        mrow += 2
        acc = acc + jnp.dot(wp_ref[g], patch.astype(jnp.bfloat16),
                            preferred_element_type=jnp.float32)

    return acc + bn_shift


def _resblock_kernel(x_ref, m_ref, wp1_ref, wc1_ref, t1_ref,
                     wp2_ref, wc2_ref, t2_ref, o_ref, *, width, hw):
    # x_ref / o_ref: (1, C, HW) block for one batch element (lane-dense, HW >= 128).
    x = x_ref[0]                 # (C, HW) f32
    masks = m_ref[...]           # (8, HW) f32, shared by both convs

    # conv1 (BN1 scale folded into weights) + shift + ReLU
    h = _conv3x3_grouped(x, wp1_ref, wc1_ref, t1_ref[...], masks, width, hw)
    h = jnp.maximum(h, 0.0)

    # conv2 (BN2 scale folded into weights) + shift
    h = _conv3x3_grouped(h, wp2_ref, wc2_ref, t2_ref[...], masks, width, hw)

    # residual add + ReLU  (lane-dense (C, HW) store)
    o_ref[0] = jnp.maximum(h + x, 0.0).astype(o_ref.dtype)


# ------------------------------ JAX wrapper -----------------------------------

def _fold_bn_into_conv(w_oihw, conv_bias, gamma, beta, mean, var, eps, c_pad):
    """Fold eval-mode BN into the conv.  Returns:
       wp (4, Cp, 2*Cp) bf16  -- tap-pair weight slabs (BN scale folded in),
       wc (Cp, Cp)      bf16  -- centre-tap weight,
       shift (Cp, 1)    f32   -- per-channel shift (beta + scale*(bias - mean)).
       Channels are zero-padded to Cp (multiple of 8)."""
    cout, cin = w_oihw.shape[0], w_oihw.shape[1]
    scale = gamma / jnp.sqrt(var + eps)                      # (Cout,)
    shift = beta + scale * (conv_bias - mean)                # (Cout,)

    # OIHW -> (tap, O, I) with tap = kh*3 + kw; fold BN scale per output channel.
    w_t = jnp.transpose(w_oihw, (2, 3, 0, 1)).reshape(9, cout, cin)
    w_t = w_t * scale[None, :, None]

    # Pad channels to the f32 sublane granule (padded rows/cols are exact zeros).
    w_t = jnp.pad(w_t, ((0, 0), (0, c_pad - cout), (0, c_pad - cin)))
    shift = jnp.pad(shift, (0, c_pad - cout)).reshape(c_pad, 1)

    wp = jnp.stack([jnp.concatenate([w_t[t0], w_t[t1]], axis=1)
                    for t0, t1 in _TAP_PAIRS], axis=0).astype(jnp.bfloat16)
    wc = w_t[_CENTER_TAP].astype(jnp.bfloat16)
    return wp, wc, shift


def _boundary_masks(H, W):
    """(8, H*W) f32 {0,1} masks for the 8 off-centre taps (order: _TAP_PAIRS
    flattened).  mask[r, p] == 1 iff that tap of output pixel p reads an
    in-bounds input pixel (zero 'same' padding otherwise)."""
    p = np.arange(H * W)
    h, w = p // W, p % W
    rows = []
    for t0, t1 in _TAP_PAIRS:
        for t in (t0, t1):
            dh, dw = divmod(t, 3)
            valid = ((h + dh - 1 >= 0) & (h + dh - 1 < H) &
                     (w + dw - 1 >= 0) & (w + dw - 1 < W))
            rows.append(valid.astype(np.float32))
    return jnp.asarray(np.stack(rows, axis=0))


@jax.jit
def resblock_pallas(x_nchw, params):
    """ResBlock forward. x_nchw: (N, C, H, W) float32 (PyTorch layout)."""
    N, C, H, W = x_nchw.shape
    HW = H * W
    eps = 1e-5
    Cp = int(-(-C // 8) * 8)       # pad channels to a multiple of 8 (f32 sublanes)

    # Glue: free reshape (contiguous), channel zero-pad, parameter folding, masks.
    x_flat = x_nchw.reshape(N, C, HW)
    if Cp != C:
        x_flat = jnp.pad(x_flat, ((0, 0), (0, Cp - C), (0, 0)))

    wp1, wc1, t1 = _fold_bn_into_conv(params["w1"], params["b1"], params["g1"],
                                      params["be1"], params["m1"], params["v1"],
                                      eps, Cp)
    wp2, wc2, t2 = _fold_bn_into_conv(params["w2"], params["b2"], params["g2"],
                                      params["be2"], params["m2"], params["v2"],
                                      eps, Cp)
    masks = _boundary_masks(H, W)

    # Advisory cost estimate (2 convs, 2*M*K*N MACs each) + HBM traffic.
    flops = 2 * 2 * N * Cp * (9 * Cp) * HW
    bytes_accessed = (2 * N * Cp * HW * 4            # x in + out
                      + masks.size * 4
                      + (wp1.size + wc1.size + wp2.size + wc2.size) * 2
                      + (t1.size + t2.size) * 4)

    out_flat = pl.pallas_call(
        functools.partial(_resblock_kernel, width=W, hw=HW),
        out_shape=jax.ShapeDtypeStruct((N, Cp, HW), x_flat.dtype),
        grid=(N,),
        in_specs=[
            pl.BlockSpec((1, Cp, HW), lambda n: (n, 0, 0)),       # x (per image)
            pl.BlockSpec((8, HW), lambda n: (0, 0)),              # boundary masks
            pl.BlockSpec((4, Cp, 2 * Cp), lambda n: (0, 0, 0)),   # conv1 tap-pair slabs
            pl.BlockSpec((Cp, Cp), lambda n: (0, 0)),             # conv1 centre tap
            pl.BlockSpec((Cp, 1), lambda n: (0, 0)),              # bn1 shift
            pl.BlockSpec((4, Cp, 2 * Cp), lambda n: (0, 0, 0)),   # conv2 tap-pair slabs
            pl.BlockSpec((Cp, Cp), lambda n: (0, 0)),             # conv2 centre tap
            pl.BlockSpec((Cp, 1), lambda n: (0, 0)),              # bn2 shift
        ],
        out_specs=pl.BlockSpec((1, Cp, HW), lambda n: (n, 0, 0)),
        compiler_params=pltpu.CompilerParams(
            dimension_semantics=("parallel",),
            vmem_limit_bytes=32 * 1024 * 1024),
        cost_estimate=pl.CostEstimate(flops=flops, transcendentals=0,
                                      bytes_accessed=bytes_accessed),
    )(x_flat, masks, wp1, wc1, t1, wp2, wc2, t2)

    # Drop zero-padded channels; free reshape back to NCHW.
    return out_flat[:, :C, :].reshape(N, C, H, W)


# ------------------------- pure-JAX reference (check) --------------------------

def resblock_ref(x, p, eps=1e-5):
    def conv(x, w, b):
        y = lax.conv_general_dilated(
            x, w, window_strides=(1, 1), padding="SAME",
            dimension_numbers=("NCHW", "OIHW", "NCHW"))
        return y + b[None, :, None, None]

    def bn(x, g, be, m, v):
        return (g[None, :, None, None] * (x - m[None, :, None, None])
                / jnp.sqrt(v[None, :, None, None] + eps)
                + be[None, :, None, None])

    out = jax.nn.relu(bn(conv(x, p["w1"], p["b1"]), p["g1"], p["be1"], p["m1"], p["v1"]))
    out = bn(conv(out, p["w2"], p["b2"]), p["g2"], p["be2"], p["m2"], p["v2"])
    return jax.nn.relu(out + x)


# ----------------------------------- main --------------------------------------

if __name__ == "__main__":
    N, C, H, W = 2, 4, 16, 16
    key = jax.random.PRNGKey(0)
    ks = jax.random.split(key, 14)

    # Deterministic synthetic parameters (shapes from ResBlock.__init__, eval-mode BN).
    params = dict(
        w1=0.2 * jax.random.normal(ks[0], (C, C, 3, 3), jnp.float32),   # OIHW
        b1=0.1 * jax.random.normal(ks[1], (C,), jnp.float32),
        g1=1.0 + 0.1 * jax.random.normal(ks[2], (C,), jnp.float32),
        be1=0.1 * jax.random.normal(ks[3], (C,), jnp.float32),
        m1=0.1 * jax.random.normal(ks[4], (C,), jnp.float32),
        v1=0.5 + jnp.abs(jax.random.normal(ks[5], (C,), jnp.float32)),
        w2=0.2 * jax.random.normal(ks[6], (C, C, 3, 3), jnp.float32),
        b2=0.1 * jax.random.normal(ks[7], (C,), jnp.float32),
        g2=1.0 + 0.1 * jax.random.normal(ks[8], (C,), jnp.float32),
        be2=0.1 * jax.random.normal(ks[9], (C,), jnp.float32),
        m2=0.1 * jax.random.normal(ks[10], (C,), jnp.float32),
        v2=0.5 + jnp.abs(jax.random.normal(ks[11], (C,), jnp.float32)),
    )

    x = jax.random.normal(ks[12], (N, C, H, W), jnp.float32)

    out = resblock_pallas(x, params)
    out = jax.block_until_ready(out)

    ref = jax.block_until_ready(resblock_ref(x, params))
    # Tolerance loosened vs. the f32 reference because matmul operands are bf16
    # (f32 accumulation); ~1e-2 relative error is expected after two convs.
    np.testing.assert_allclose(np.asarray(out), np.asarray(ref), rtol=3e-2, atol=3e-2)

    print("KERNEL_OK")
</pallas_src>

<mosaic_0001>
module attributes {stable_mosaic.version = 11 : i64} {
  func.func @_resblock_kernel(%arg0: i32, %arg1: memref<1x8x256xf32, #tpu.memory_space<vmem>>, %arg2: memref<8x256xf32, #tpu.memory_space<vmem>>, %arg3: memref<4x8x16xbf16, #tpu.memory_space<vmem>>, %arg4: memref<8x8xbf16, #tpu.memory_space<vmem>>, %arg5: memref<8x1xf32, #tpu.memory_space<vmem>>, %arg6: memref<4x8x16xbf16, #tpu.memory_space<vmem>>, %arg7: memref<8x8xbf16, #tpu.memory_space<vmem>>, %arg8: memref<8x1xf32, #tpu.memory_space<vmem>>, %arg9: memref<1x8x256xf32, #tpu.memory_space<vmem>>) attributes {dimension_semantics = [#tpu.dimension_semantics<parallel>], iteration_bounds = array<i64: 2>, scalar_prefetch = 0 : i64, scratch_operands = 0 : i64, tpu.core_type = #tpu.core_type<tc>, window_params = [{transform_indices = @transform_0, window_bounds = array<i64: 1, 8, 256>}, {pipeline_mode = #tpu.pipeline_mode<synchronous>, transform_indices = @transform_1, window_bounds = array<i64: 8, 256>}, {pipeline_mode = #tpu.pipeline_mode<synchronous>, transform_indices = @transform_2, window_bounds = array<i64: 4, 8, 16>}, {pipeline_mode = #tpu.pipeline_mode<synchronous>, transform_indices = @transform_3, window_bounds = array<i64: 8, 8>}, {pipeline_mode = #tpu.pipeline_mode<synchronous>, transform_indices = @transform_4, window_bounds = array<i64: 8, 1>}, {pipeline_mode = #tpu.pipeline_mode<synchronous>, transform_indices = @transform_5, window_bounds = array<i64: 4, 8, 16>}, {pipeline_mode = #tpu.pipeline_mode<synchronous>, transform_indices = @transform_6, window_bounds = array<i64: 8, 8>}, {pipeline_mode = #tpu.pipeline_mode<synchronous>, transform_indices = @transform_7, window_bounds = array<i64: 8, 1>}, {transform_indices = @transform_8, window_bounds = array<i64: 1, 8, 256>}]} {
    %c0 = arith.constant 0 : index
    %c0_0 = arith.constant 0 : index
    %c0_1 = arith.constant 0 : index
    %0 = vector.load %arg1[%c0, %c0_0, %c0_1] : memref<1x8x256xf32, #tpu.memory_space<vmem>>, vector<1x8x256xf32>
    %1 = vector.shape_cast %0 : vector<1x8x256xf32> to vector<8x256xf32>
    %c0_2 = arith.constant 0 : index
    %c0_3 = arith.constant 0 : index
    %2 = vector.load %arg2[%c0_2, %c0_3] : memref<8x256xf32, #tpu.memory_space<vmem>>, vector<8x256xf32>
    %c0_4 = arith.constant 0 : index
    %c0_5 = arith.constant 0 : index
    %3 = vector.load %arg5[%c0_4, %c0_5] : memref<8x1xf32, #tpu.memory_space<vmem>>, vector<8x1xf32>
    %c0_6 = arith.constant 0 : index
    %c0_7 = arith.constant 0 : index
    %4 = vector.load %arg4[%c0_6, %c0_7] : memref<8x8xbf16, #tpu.memory_space<vmem>>, vector<8x8xbf16>
    %5 = arith.truncf %1 : vector<8x256xf32> to vector<8x256xbf16>
    %cst = arith.constant dense<0.000000e+00> : vector<8x256xf32>
    %6 = tpu.matmul %4, %5, %cst {dimension_numbers = #tpu.dot_dimension_numbers<[1], [0], [0], [1], [0, 0, 1, 1], [], []>} : vector<8x8xbf16>, vector<8x256xbf16>, vector<8x256xf32> -> vector<8x256xf32>
    %c17_i32 = arith.constant 17 : i32
    %7 = tpu.dynamic_rotate %1 by %c17_i32 dim 1 : vector<8x256xf32>, i32 -> vector<8x256xf32>
    %8 = vector.extract_strided_slice %2 {offsets = [0, 0], sizes = [1, 256], strides = [1, 1]} : vector<8x256xf32> to vector<1x256xf32>
    %9 = vector.broadcast %8 : vector<1x256xf32> to vector<8x256xf32>
    %10 = arith.mulf %7, %9 : vector<8x256xf32>
    %c16_i32 = arith.constant 16 : i32
    %11 = tpu.dynamic_rotate %1 by %c16_i32 dim 1 : vector<8x256xf32>, i32 -> vector<8x256xf32>
    %12 = vector.extract_strided_slice %2 {offsets = [1, 0], sizes = [1, 256], strides = [1, 1]} : vector<8x256xf32> to vector<1x256xf32>
    %13 = vector.broadcast %12 : vector<1x256xf32> to vector<8x256xf32>
    %14 = arith.mulf %11, %13 : vector<8x256xf32>
    %15 = tpu.concatenate %10, %14 in 0 : vector<8x256xf32>, vector<8x256xf32> -> vector<16x256xf32>
    %c0_8 = arith.constant 0 : index
    %c0_9 = arith.constant 0 : index
    %c0_10 = arith.constant 0 : index
    %16 = vector.load %arg3[%c0_8, %c0_9, %c0_10] : memref<4x8x16xbf16, #tpu.memory_space<vmem>>, vector<1x8x16xbf16>
    %17 = vector.shape_cast %16 : vector<1x8x16xbf16> to vector<8x16xbf16>
    %18 = arith.truncf %15 : vector<16x256xf32> to vector<16x256xbf16>
    %cst_11 = arith.constant dense<0.000000e+00> : vector<8x256xf32>
    %19 = tpu.matmul %17, %18, %cst_11 {dimension_numbers = #tpu.dot_dimension_numbers<[1], [0], [0], [1], [0, 0, 1, 1], [], []>} : vector<8x16xbf16>, vector<16x256xbf16>, vector<8x256xf32> -> vector<8x256xf32>
    %20 = arith.addf %6, %19 : vector<8x256xf32>
    %c15_i32 = arith.constant 15 : i32
    %21 = tpu.dynamic_rotate %1 by %c15_i32 dim 1 : vector<8x256xf32>, i32 -> vector<8x256xf32>
    %22 = vector.extract_strided_slice %2 {offsets = [2, 0], sizes = [1, 256], strides = [1, 1]} : vector<8x256xf32> to vector<1x256xf32>
    %23 = vector.broadcast %22 : vector<1x256xf32> to vector<8x256xf32>
    %24 = arith.mulf %21, %23 : vector<8x256xf32>
    %c1_i32 = arith.constant 1 : i32
    %25 = tpu.dynamic_rotate %1 by %c1_i32 dim 1 : vector<8x256xf32>, i32 -> vector<8x256xf32>
    %26 = vector.extract_strided_slice %2 {offsets = [3, 0], sizes = [1, 256], strides = [1, 1]} : vector<8x256xf32> to vector<1x256xf32>
    %27 = vector.broadcast %26 : vector<1x256xf32> to vector<8x256xf32>
    %28 = arith.mulf %25, %27 : vector<8x256xf32>
    %29 = tpu.concatenate %24, %28 in 0 : vector<8x256xf32>, vector<8x256xf32> -> vector<16x256xf32>
    %c1 = arith.constant 1 : index
    %c0_12 = arith.constant 0 : index
    %c0_13 = arith.constant 0 : index
    %30 = vector.load %arg3[%c1, %c0_12, %c0_13] : memref<4x8x16xbf16, #tpu.memory_space<vmem>>, vector<1x8x16xbf16>
    %31 = vector.shape_cast %30 : vector<1x8x16xbf16> to vector<8x16xbf16>
    %32 = arith.truncf %29 : vector<16x256xf32> to vector<16x256xbf16>
    %cst_14 = arith.constant dense<0.000000e+00> : vector<8x256xf32>
    %33 = tpu.matmul %31, %32, %cst_14 {dimension_numbers = #tpu.dot_dimension_numbers<[1], [0], [0], [1], [0, 0, 1, 1], [], []>} : vector<8x16xbf16>, vector<16x256xbf16>, vector<8x256xf32> -> vector<8x256xf32>
    %34 = arith.addf %20, %33 : vector<8x256xf32>
    %c255_i32 = arith.constant 255 : i32
    %35 = tpu.dynamic_rotate %1 by %c255_i32 dim 1 : vector<8x256xf32>, i32 -> vector<8x256xf32>
    %36 = vector.extract_strided_slice %2 {offsets = [4, 0], sizes = [1, 256], strides = [1, 1]} : vector<8x256xf32> to vector<1x256xf32>
    %37 = vector.broadcast %36 : vector<1x256xf32> to vector<8x256xf32>
    %38 = arith.mulf %35, %37 : vector<8x256xf32>
    %c241_i32 = arith.constant 241 : i32
    %39 = tpu.dynamic_rotate %1 by %c241_i32 dim 1 : vector<8x256xf32>, i32 -> vector<8x256xf32>
    %40 = vector.extract_strided_slice %2 {offsets = [5, 0], sizes = [1, 256], strides = [1, 1]} : vector<8x256xf32> to vector<1x256xf32>
    %41 = vector.broadcast %40 : vector<1x256xf32> to vector<8x256xf32>
    %42 = arith.mulf %39, %41 : vector<8x256xf32>
    %43 = tpu.concatenate %38, %42 in 0 : vector<8x256xf32>, vector<8x256xf32> -> vector<16x256xf32>
    %c2 = arith.constant 2 : index
    %c0_15 = arith.constant 0 : index
    %c0_16 = arith.constant 0 : index
    %44 = vector.load %arg3[%c2, %c0_15, %c0_16] : memref<4x8x16xbf16, #tpu.memory_space<vmem>>, vector<1x8x16xbf16>
    %45 = vector.shape_cast %44 : vector<1x8x16xbf16> to vector<8x16xbf16>
    %46 = arith.truncf %43 : vector<16x256xf32> to vector<16x256xbf16>
    %cst_17 = arith.constant dense<0.000000e+00> : vector<8x256xf32>
    %47 = tpu.matmul %45, %46, %cst_17 {dimension_numbers = #tpu.dot_dimension_numbers<[1], [0], [0], [1], [0, 0, 1, 1], [], []>} : vector<8x16xbf16>, vector<16x256xbf16>, vector<8x256xf32> -> vector<8x256xf32>
    %48 = arith.addf %34, %47 : vector<8x256xf32>
    %c240_i32 = arith.constant 240 : i32
    %49 = tpu.dynamic_rotate %1 by %c240_i32 dim 1 : vector<8x256xf32>, i32 -> vector<8x256xf32>
    %50 = vector.extract_strided_slice %2 {offsets = [6, 0], sizes = [1, 256], strides = [1, 1]} : vector<8x256xf32> to vector<1x256xf32>
    %51 = vector.broadcast %50 : vector<1x256xf32> to vector<8x256xf32>
    %52 = arith.mulf %49, %51 : vector<8x256xf32>
    %c239_i32 = arith.constant 239 : i32
    %53 = tpu.dynamic_rotate %1 by %c239_i32 dim 1 : vector<8x256xf32>, i32 -> vector<8x256xf32>
    %54 = vector.extract_strided_slice %2 {offsets = [7, 0], sizes = [1, 256], strides = [1, 1]} : vector<8x256xf32> to vector<1x256xf32>
    %55 = vector.broadcast %54 : vector<1x256xf32> to vector<8x256xf32>
    %56 = arith.mulf %53, %55 : vector<8x256xf32>
    %57 = tpu.concatenate %52, %56 in 0 : vector<8x256xf32>, vector<8x256xf32> -> vector<16x256xf32>
    %c3 = arith.constant 3 : index
    %c0_18 = arith.constant 0 : index
    %c0_19 = arith.constant 0 : index
    %58 = vector.load %arg3[%c3, %c0_18, %c0_19] : memref<4x8x16xbf16, #tpu.memory_space<vmem>>, vector<1x8x16xbf16>
    %59 = vector.shape_cast %58 : vector<1x8x16xbf16> to vector<8x16xbf16>
    %60 = arith.truncf %57 : vector<16x256xf32> to vector<16x256xbf16>
    %cst_20 = arith.constant dense<0.000000e+00> : vector<8x256xf32>
    %61 = tpu.matmul %59, %60, %cst_20 {dimension_numbers = #tpu.dot_dimension_numbers<[1], [0], [0], [1], [0, 0, 1, 1], [], []>} : vector<8x16xbf16>, vector<16x256xbf16>, vector<8x256xf32> -> vector<8x256xf32>
    %62 = arith.addf %48, %61 : vector<8x256xf32>
    %63 = vector.broadcast %3 : vector<8x1xf32> to vector<8x256xf32>
    %64 = arith.addf %62, %63 : vector<8x256xf32>
    %cst_21 = arith.constant 0.000000e+00 : f32
    %65 = vector.broadcast %cst_21 : f32 to vector<8x256xf32>
    %66 = arith.maximumf %64, %65 : vector<8x256xf32>
    %c0_22 = arith.constant 0 : index
    %c0_23 = arith.constant 0 : index
    %67 = vector.load %arg8[%c0_22, %c0_23] : memref<8x1xf32, #tpu.memory_space<vmem>>, vector<8x1xf32>
    %c0_24 = arith.constant 0 : index
    %c0_25 = arith.constant 0 : index
    %68 = vector.load %arg7[%c0_24, %c0_25] : memref<8x8xbf16, #tpu.memory_space<vmem>>, vector<8x8xbf16>
    %69 = arith.truncf %66 : vector<8x256xf32> to vector<8x256xbf16>
    %cst_26 = arith.constant dense<0.000000e+00> : vector<8x256xf32>
    %70 = tpu.matmul %68, %69, %cst_26 {dimension_numbers = #tpu.dot_dimension_numbers<[1], [0], [0], [1], [0, 0, 1, 1], [], []>} : vector<8x8xbf16>, vector<8x256xbf16>, vector<8x256xf32> -> vector<8x256xf32>
    %c17_i32_27 = arith.constant 17 : i32
    %71 = tpu.dynamic_rotate %66 by %c17_i32_27 dim 1 : vector<8x256xf32>, i32 -> vector<8x256xf32>
    %72 = vector.extract_strided_slice %2 {offsets = [0, 0], sizes = [1, 256], strides = [1, 1]} : vector<8x256xf32> to vector<1x256xf32>
    %73 = vector.broadcast %72 : vector<1x256xf32> to vector<8x256xf32>
    %74 = arith.mulf %71, %73 : vector<8x256xf32>
    %c16_i32_28 = arith.constant 16 : i32
    %75 = tpu.dynamic_rotate %66 by %c16_i32_28 dim 1 : vector<8x256xf32>, i32 -> vector<8x256xf32>
    %76 = vector.extract_strided_slice %2 {offsets = [1, 0], sizes = [1, 256], strides = [1, 1]} : vector<8x256xf32> to vector<1x256xf32>
    %77 = vector.broadcast %76 : vector<1x256xf32> to vector<8x256xf32>
    %78 = arith.mulf %75, %77 : vector<8x256xf32>
    %79 = tpu.concatenate %74, %78 in 0 : vector<8x256xf32>, vector<8x256xf32> -> vector<16x256xf32>
    %c0_29 = arith.constant 0 : index
    %c0_30 = arith.constant 0 : index
    %c0_31 = arith.constant 0 : index
    %80 = vector.load %arg6[%c0_29, %c0_30, %c0_31] : memref<4x8x16xbf16, #tpu.memory_space<vmem>>, vector<1x8x16xbf16>
    %81 = vector.shape_cast %80 : vector<1x8x16xbf16> to vector<8x16xbf16>
    %82 = arith.truncf %79 : vector<16x256xf32> to vector<16x256xbf16>
    %cst_32 = arith.constant dense<0.000000e+00> : vector<8x256xf32>
    %83 = tpu.matmul %81, %82, %cst_32 {dimension_numbers = #tpu.dot_dimension_numbers<[1], [0], [0], [1], [0, 0, 1, 1], [], []>} : vector<8x16xbf16>, vector<16x256xbf16>, vector<8x256xf32> -> vector<8x256xf32>
    %84 = arith.addf %70, %83 : vector<8x256xf32>
    %c15_i32_33 = arith.constant 15 : i32
    %85 = tpu.dynamic_rotate %66 by %c15_i32_33 dim 1 : vector<8x256xf32>, i32 -> vector<8x256xf32>
    %86 = vector.extract_strided_slice %2 {offsets = [2, 0], sizes = [1, 256], strides = [1, 1]} : vector<8x256xf32> to vector<1x256xf32>
    %87 = vector.broadcast %86 : vector<1x256xf32> to vector<8x256xf32>
    %88 = arith.mulf %85, %87 : vector<8x256xf32>
    %c1_i32_34 = arith.constant 1 : i32
    %89 = tpu.dynamic_rotate %66 by %c1_i32_34 dim 1 : vector<8x256xf32>, i32 -> vector<8x256xf32>
    %90 = vector.extract_strided_slice %2 {offsets = [3, 0], sizes = [1, 256], strides = [1, 1]} : vector<8x256xf32> to vector<1x256xf32>
    %91 = vector.broadcast %90 : vector<1x256xf32> to vector<8x256xf32>
    %92 = arith.mulf %89, %91 : vector<8x256xf32>
    %93 = tpu.concatenate %88, %92 in 0 : vector<8x256xf32>, vector<8x256xf32> -> vector<16x256xf32>
    %c1_35 = arith.constant 1 : index
    %c0_36 = arith.constant 0 : index
    %c0_37 = arith.constant 0 : index
    %94 = vector.load %arg6[%c1_35, %c0_36, %c0_37] : memref<4x8x16xbf16, #tpu.memory_space<vmem>>, vector<1x8x16xbf16>
    %95 = vector.shape_cast %94 : vector<1x8x16xbf16> to vector<8x16xbf16>
    %96 = arith.truncf %93 : vector<16x256xf32> to vector<16x256xbf16>
    %cst_38 = arith.constant dense<0.000000e+00> : vector<8x256xf32>
    %97 = tpu.matmul %95, %96, %cst_38 {dimension_numbers = #tpu.dot_dimension_numbers<[1], [0], [0], [1], [0, 0, 1, 1], [], []>} : vector<8x16xbf16>, vector<16x256xbf16>, vector<8x256xf32> -> vector<8x256xf32>
    %98 = arith.addf %84, %97 : vector<8x256xf32>
    %c255_i32_39 = arith.constant 255 : i32
    %99 = tpu.dynamic_rotate %66 by %c255_i32_39 dim 1 : vector<8x256xf32>, i32 -> vector<8x256xf32>
    %100 = vector.extract_strided_slice %2 {offsets = [4, 0], sizes = [1, 256], strides = [1, 1]} : vector<8x256xf32> to vector<1x256xf32>
    %101 = vector.broadcast %100 : vector<1x256xf32> to vector<8x256xf32>
    %102 = arith.mulf %99, %101 : vector<8x256xf32>
    %c241_i32_40 = arith.constant 241 : i32
    %103 = tpu.dynamic_rotate %66 by %c241_i32_40 dim 1 : vector<8x256xf32>, i32 -> vector<8x256xf32>
    %104 = vector.extract_strided_slice %2 {offsets = [5, 0], sizes = [1, 256], strides = [1, 1]} : vector<8x256xf32> to vector<1x256xf32>
    %105 = vector.broadcast %104 : vector<1x256xf32> to vector<8x256xf32>
    %106 = arith.mulf %103, %105 : vector<8x256xf32>
    %107 = tpu.concatenate %102, %106 in 0 : vector<8x256xf32>, vector<8x256xf32> -> vector<16x256xf32>
    %c2_41 = arith.constant 2 : index
    %c0_42 = arith.constant 0 : index
    %c0_43 = arith.constant 0 : index
    %108 = vector.load %arg6[%c2_41, %c0_42, %c0_43] : memref<4x8x16xbf16, #tpu.memory_space<vmem>>, vector<1x8x16xbf16>
    %109 = vector.shape_cast %108 : vector<1x8x16xbf16> to vector<8x16xbf16>
    %110 = arith.truncf %107 : vector<16x256xf32> to vector<16x256xbf16>
    %cst_44 = arith.constant dense<0.000000e+00> : vector<8x256xf32>
    %111 = tpu.matmul %109, %110, %cst_44 {dimension_numbers = #tpu.dot_dimension_numbers<[1], [0], [0], [1], [0, 0, 1, 1], [], []>} : vector<8x16xbf16>, vector<16x256xbf16>, vector<8x256xf32> -> vector<8x256xf32>
    %112 = arith.addf %98, %111 : vector<8x256xf32>
    %c240_i32_45 = arith.constant 240 : i32
    %113 = tpu.dynamic_rotate %66 by %c240_i32_45 dim 1 : vector<8x256xf32>, i32 -> vector<8x256xf32>
    %114 = vector.extract_strided_slice %2 {offsets = [6, 0], sizes = [1, 256], strides = [1, 1]} : vector<8x256xf32> to vector<1x256xf32>
    %115 = vector.broadcast %114 : vector<1x256xf32> to vector<8x256xf32>
    %116 = arith.mulf %113, %115 : vector<8x256xf32>
    %c239_i32_46 = arith.constant 239 : i32
    %117 = tpu.dynamic_rotate %66 by %c239_i32_46 dim 1 : vector<8x256xf32>, i32 -> vector<8x256xf32>
    %118 = vector.extract_strided_slice %2 {offsets = [7, 0], sizes = [1, 256], strides = [1, 1]} : vector<8x256xf32> to vector<1x256xf32>
    %119 = vector.broadcast %118 : vector<1x256xf32> to vector<8x256xf32>
    %120 = arith.mulf %117, %119 : vector<8x256xf32>
    %121 = tpu.concatenate %116, %120 in 0 : vector<8x256xf32>, vector<8x256xf32> -> vector<16x256xf32>
    %c3_47 = arith.constant 3 : index
    %c0_48 = arith.constant 0 : index
    %c0_49 = arith.constant 0 : index
    %122 = vector.load %arg6[%c3_47, %c0_48, %c0_49] : memref<4x8x16xbf16, #tpu.memory_space<vmem>>, vector<1x8x16xbf16>
    %123 = vector.shape_cast %122 : vector<1x8x16xbf16> to vector<8x16xbf16>
    %124 = arith.truncf %121 : vector<16x256xf32> to vector<16x256xbf16>
    %cst_50 = arith.constant dense<0.000000e+00> : vector<8x256xf32>
    %125 = tpu.matmul %123, %124, %cst_50 {dimension_numbers = #tpu.dot_dimension_numbers<[1], [0], [0], [1], [0, 0, 1, 1], [], []>} : vector<8x16xbf16>, vector<16x256xbf16>, vector<8x256xf32> -> vector<8x256xf32>
    %126 = arith.addf %112, %125 : vector<8x256xf32>
    %127 = vector.broadcast %67 : vector<8x1xf32> to vector<8x256xf32>
    %128 = arith.addf %126, %127 : vector<8x256xf32>
    %129 = arith.addf %128, %1 : vector<8x256xf32>
    %cst_51 = arith.constant 0.000000e+00 : f32
    %130 = vector.broadcast %cst_51 : f32 to vector<8x256xf32>
    %131 = arith.maximumf %129, %130 : vector<8x256xf32>
    %c0_52 = arith.constant 0 : index
    %c0_53 = arith.constant 0 : index
    %c0_54 = arith.constant 0 : index
    %132 = vector.load %arg9[%c0_52, %c0_53, %c0_54] : memref<1x8x256xf32, #tpu.memory_space<vmem>>, vector<1x8x256xf32>
    %133 = vector.shape_cast %132 : vector<1x8x256xf32> to vector<8x256xf32>
    %134 = vector.shape_cast %131 : vector<8x256xf32> to vector<1x8x256xf32>
    tpu.vector_store %arg9[%c0_52, %c0_53, %c0_54], %134 {strides = array<i32>} : memref<1x8x256xf32, #tpu.memory_space<vmem>>, vector<1x8x256xf32>,
    return
  }
  func.func @transform_0(%arg0: i32) -> (i32, i32, i32) {
    %c0_i32 = arith.constant 0 : i32
    %c0_i32_0 = arith.constant 0 : i32
    %c0_i32_1 = arith.constant 0 : i32
    return %arg0, %c0_i32, %c0_i32_0 : i32, i32, i32
  }
  func.func @transform_1(%arg0: i32) -> (i32, i32) {
    %c0_i32 = arith.constant 0 : i32
    %c0_i32_0 = arith.constant 0 : i32
    %c0_i32_1 = arith.constant 0 : i32
    return %c0_i32, %c0_i32_0 : i32, i32
  }
  func.func @transform_2(%arg0: i32) -> (i32, i32, i32) {
    %c0_i32 = arith.constant 0 : i32
    %c0_i32_0 = arith.constant 0 : i32
    %c0_i32_1 = arith.constant 0 : i32
    %c0_i32_2 = arith.constant 0 : i32
    return %c0_i32, %c0_i32_0, %c0_i32_1 : i32, i32, i32
  }
  func.func @transform_3(%arg0: i32) -> (i32, i32) {
    %c0_i32 = arith.constant 0 : i32
    %c0_i32_0 = arith.constant 0 : i32
    %c0_i32_1 = arith.constant 0 : i32
    return %c0_i32, %c0_i32_0 : i32, i32
  }
  func.func @transform_4(%arg0: i32) -> (i32, i32) {
    %c0_i32 = arith.constant 0 : i32
    %c0_i32_0 = arith.constant 0 : i32
    %c0_i32_1 = arith.constant 0 : i32
    return %c0_i32, %c0_i32_0 : i32, i32
  }
  func.func @transform_5(%arg0: i32) -> (i32, i32, i32) {
    %c0_i32 = arith.constant 0 : i32
    %c0_i32_0 = arith.constant 0 : i32
    %c0_i32_1 = arith.constant 0 : i32
    %c0_i32_2 = arith.constant 0 : i32
    return %c0_i32, %c0_i32_0, %c0_i32_1 : i32, i32, i32
  }
  func.func @transform_6(%arg0: i32) -> (i32, i32) {
    %c0_i32 = arith.constant 0 : i32
    %c0_i32_0 = arith.constant 0 : i32
    %c0_i32_1 = arith.constant 0 : i32
    return %c0_i32, %c0_i32_0 : i32, i32
  }
  func.func @transform_7(%arg0: i32) -> (i32, i32) {
    %c0_i32 = arith.constant 0 : i32
    %c0_i32_0 = arith.constant 0 : i32
    %c0_i32_1 = arith.constant 0 : i32
    return %c0_i32, %c0_i32_0 : i32, i32
  }
  func.func @transform_8(%arg0: i32) -> (i32, i32, i32) {
    %c0_i32 = arith.constant 0 : i32
    %c0_i32_0 = arith.constant 0 : i32
    %c0_i32_1 = arith.constant 0 : i32
    return %arg0, %c0_i32, %c0_i32_0 : i32, i32, i32
  }
}

</mosaic_0001>

<bundles_post_ra>
// kernel: resblock_pallas.1
= control target key start
LH: loop header
LB: loop body
LE: loop exit
PB: predicated region body
PF: predicated region fallthrough
CT: control target
= control target key end

     0   :  { %s1206_s27 = smov 0   ;;  %s1523_s0 = inlined_call_operand.vmem [shape: f32[2,8,256], index: 0, kind: input, shape index: {}]   ;;  %s1524_s1 = inlined_call_operand.vmem [shape: f32[8,256], index: 1, kind: input, shape index: {}]   ;;  %s1525_s2 = inlined_call_operand.vmem [shape: bf16[4,8,16], index: 2, kind: input, shape index: {}]   ;;  %s1526_s3 = inlined_call_operand.vmem [shape: bf16[8,8], index: 3, kind: input, shape index: {}]   ;;  %s1527_s4 = inlined_call_operand.vmem [shape: f32[8,1], index: 4, kind: input, shape index: {}]   ;;  %s1528_s5 = inlined_call_operand.vmem [shape: bf16[4,8,16], index: 5, kind: input, shape index: {}]   ;;  %s1529_s6 = inlined_call_operand.vmem [shape: bf16[8,8], index: 6, kind: input, shape index: {}]   ;;  %s1530_s7 = inlined_call_operand.vmem [shape: f32[8,1], index: 7, kind: input, shape index: {}]   ;;  %s1531_s8 = inlined_call_operand.vmem [shape: f32[2,8,256], index: 8, kind: output, shape index: {}]  }
   0x1 LB: > { %s1095_s28 = sadd.s32 4294967295, %s1150_s27   ;;  %p1099_p0 = scmp.ge.s32.totalorder %s1150_s27, 1  ;;  %s1150_s27 = sphi %s1206_s27, %s18_s27  }
   0x2   : > { %p262_p1 = scmp.lt.s32.totalorder %s1150_s27, 3 }
   0x4   : > { %p263_p2 = pnand %p1099_p0, %p262_p1 }
   0x5   : > { %p296_p3 = scmp.lt.s32.totalorder (!%p263_p2), %s1095_s28, 1  ;;  %s1152_s11 = smov (!%p263_p2), 16  }
   0x6   : > { %266 = sbr.rel (%p263_p2) target bundleno = 727 (0x2d7), region = 52  ;;  %s1153_s12 = smov (!%p263_p2), 17  }
   0x7   : > { %s1155_s15 = smov (!%p263_p2), 15   ;;  %s1156_s16 = smov (!%p263_p2), 1  }
   0x8   : > { %s1157_s17 = smov (!%p263_p2), 127   ;;  %s1158_s18 = smov (!%p263_p2), 113  }
   0x9   : > { %s1159_s19 = smov (!%p263_p2), 112   ;;  %s1160_s20 = smov (!%p263_p2), 111  }
   0xb   : > { %s1533_s28 = smov (!%p296_p3, %s1095_s28), 1  ;;  %v1154_v2 = vmov 0   ;;  %vm403_vm0 = vcmask 1043456   ;;  %v312_v6 = vld [vmem:[%s1526_s3] sm:$0xf]  ;;  %vm399_vm1 = vcmask 64512   ;;  %v319_v8 = vlaneseq }
   0xc   : > { %s1124_s29 = sshll.u32 %s1533_s28, 4  ;;  %390 = vmatprep.mubr.bf16.mxu0 %v1154_v2  ;;  %442 = vmatprep.mubr.bf16.mxu1 %v1154_v2  ;;  %v311_v7 = vld [vmem:[%s1527_s4] sm:$0xff]  ;;  %v1289_v14 = vld [vmem:[%s1524_s1 + $0x8] sm:$0xff]  ;;  %vm354_vm6 = vcmask 130048  }
   0xd   : > { %s300_s10 = scalar_lea.vmem %s1523_s0, %s1124_s29  ;;  %1143 = vset.pattern.permute.xlu0 %v1154_v2  ;;  %v1275_v9 = vshrl.u32 %v319_v8, 7  ;;  %v1277_v10 = vand.u32 127, %v319_v8  ;;  %v1284_v13 = vld [vmem:[%s1524_s1] sm:$0xff]  ;;  %s305_s13 = scalar_lea.vmem %s1531_s8, %s1124_s29 }
   0xe   : > { %v1222_v0 = vld [vmem:[%s300_s10] sm:$0xff]  ;;  %v1228_v1 = vld [vmem:[%s300_s10 + $0x8] sm:$0xff] }
   0xf   : > { %334 = vrot.lane.b32.xlu1 %v1222_v0, %s1152_s11  ;;  %315 = vrot.lane.b32.xlu0 %v1222_v0, %s1153_s12  ;;  %v314_v3 = vpack.c.bf16 %v1228_v1, %v1228_v1  ;;  %v313_v4 = vpack.c.bf16 %v1222_v0, %v1222_v0  ;;  %v343_v11 = vsub.s32 1, %v1275_v9  ;;  %v326_v12 = vsub.s32 0, %v1275_v9  ;;  %v351_v43 = vld [vmem:[%s1525_s2] sm:$0xf] }
  0x10   : > { %vm338_vm2 = vcmp.lt.s32.totalorder %v1277_v10, 16  ;;  %vm321_vm3 = vcmp.lt.s32.totalorder %v1277_v10, 17  ;;  %v460_v23 = vsub.s32 2, %v1275_v9  ;;  %v477_v24 = vsub.s32 3, %v1275_v9 }
  0x11   : > { %1105 = vmatprep.subr.msk.bf16.mxu1 %vm403_vm0, %v314_v3  ;;  %v405_v5 = vsel %vm403_vm0, %v313_v4, 0  ;;  %v1294_v17 = vrot.slane %v1284_v13, %v343_v11  ;;  %v1297_v18 = vrot.slane %v1284_v13, %v326_v12  ;;  %v1300_v19 = vrot.slane %v1289_v14, %v326_v12  ;;  %v1107_v3 = vld [vmem:[%s1525_s2 + $0x4] sm:$0xf] }
  0x12   : > { %425 = vmatpush1.bf16.msra.mxu1 %v405_v5  ;;  %v1303_v20 = vrot.slane %v1289_v14, %v343_v11  ;;  %vm455_vm4 = vcmp.lt.s32.totalorder %v1277_v10, 15  ;;  %vm472_vm5 = vcmp.lt.s32.totalorder %v1277_v10, 1  ;;  %v1322_v37 = vrot.slane %v1284_v13, %v460_v23 }
  0x13   : > { %336 = vrot.lane.b32.xlu1 %v1228_v1, %s1152_s11  ;;  %317 = vrot.lane.b32.xlu0 %v1228_v1, %s1153_s12  ;;  %v1325_v38 = vrot.slane %v1289_v14, %v460_v23  ;;  %v1328_v39 = vrot.slane %v1284_v13, %v477_v24  ;;  %v1331_v40 = vrot.slane %v1289_v14, %v477_v24  ;;  %v544_v48 = vsub.s32 4, %v1275_v9 }
  0x14   : > { %v561_v49 = vsub.s32 5, %v1275_v9  ;;  %vm539_vm7 = vcmp.lt.s32.totalorder %v1277_v10, 127  ;;  %vm556_vm8 = vcmp.lt.s32.totalorder %v1277_v10, 113  ;;  %v628_v8 = vsub.s32 6, %v1275_v9 }
  0x15   : > { %1106 = vmatmul.mubr.msk.bf16.vlgmr.msra.gmra.mxu1 %vm399_vm1, %v312_v6  ;;  %v1354_v58 = vrot.slane %v1284_v13, %v544_v48  ;;  %v1357_v59 = vrot.slane %v1289_v14, %v544_v48  ;;  %v645_v11 = vsub.s32 7, %v1275_v9  ;;  %vm623_vm9 = vcmp.lt.s32.totalorder %v1277_v10, 112 }
  0x16   : > { %608 = vmatprep.mubr.bf16.mxu1 %v1154_v2  ;;  %v1361_v60 = vrot.slane %v1284_v13, %v561_v49  ;;  %v1364_v61 = vrot.slane %v1289_v14, %v561_v49  ;;  %v1387_v9 = vrot.slane %v1284_v13, %v628_v8  ;;  %vm640_vm10 = vcmp.lt.s32.totalorder %v1277_v10, 111 }
  0x17   : > { %453 = vrot.lane.b32.xlu1 %v1228_v1, %s1155_s15  ;;  %451 = vrot.lane.b32.xlu0 %v1222_v0, %s1155_s15 }
  0x1b   : > { %470 = vrot.lane.b32.xlu1 %v1228_v1, %s1156_s16  ;;  %468 = vrot.lane.b32.xlu0 %v1222_v0, %s1156_s16 }
  0x1f   : > { %537 = vrot.lane.b32.xlu1 %v1228_v1, %s1157_s17  ;;  %535 = vrot.lane.b32.xlu0 %v1222_v0, %s1157_s17 }
  0x23   : > { %554 = vrot.lane.b32.xlu1 %v1228_v1, %s1158_s18  ;;  %552 = vrot.lane.b32.xlu0 %v1222_v0, %s1158_s18 }
  0x27   : > { %621 = vrot.lane.b32.xlu1 %v1228_v1, %s1159_s19  ;;  %619 = vrot.lane.b32.xlu0 %v1222_v0, %s1159_s19 }
  0x2b   : > { %638 = vrot.lane.b32.xlu1 %v1228_v1, %s1160_s20  ;;  %636 = vrot.lane.b32.xlu0 %v1222_v0, %s1160_s20 }
  0x2f   : > { %705 = vperm.xlu0 %1143, %v311_v7  }
  0x81   : > { %v335_v15 = vpop.permute.xlu1 %334  ;;  %v316_v16 = vpop.permute.xlu0 %315 }
  0x85   : > { %v337_v21 = vpop.permute.xlu1 %336  ;;  %v318_v22 = vpop.permute.xlu0 %317 }
  0x86   : > { %v339_v25 = vsel %vm338_vm2, %v335_v15, %v337_v21  ;;  %v340_v26 = vsel %vm338_vm2, %v337_v21, %v335_v15  ;;  %v322_v27 = vsel %vm321_vm3, %v316_v16, %v318_v22  ;;  %v323_v28 = vsel %vm321_vm3, %v318_v22, %v316_v16 }
  0x87   : > { %v349_v29 = vmul.f32 %v1294_v17, %v340_v26  ;;  %v332_v30 = vmul.f32 %v1297_v18, %v323_v28  ;;  %v333_v31 = vmul.f32 %v1300_v19, %v322_v27  ;;  %v350_v32 = vmul.f32 %v1303_v20, %v339_v25 }
  0x88   : > { %v1390_v26 = vrot.slane %v1289_v14, %v628_v8  ;;  %v1394_v27 = vrot.slane %v1284_v13, %v645_v11  ;;  %v1397_v28 = vrot.slane %v1289_v14, %v645_v11 }
  0x89   : > { %v454_v33 = vpop.permute.xlu1 %453  ;;  %v452_v34 = vpop.permute.xlu0 %451  ;;  %v353_v35 = vpack.c.bf16 %v350_v32, %v333_v31  ;;  %v352_v36 = vpack.c.bf16 %v349_v29, %v332_v30  ;;  %v1109_v31 = vld [vmem:[%s1525_s2 + $0x8] sm:$0xf] }
  0x8a   : > { %v456_v41 = vsel %vm455_vm4, %v452_v34, %v454_v33  ;;  %v457_v42 = vsel %vm455_vm4, %v454_v33, %v452_v34 }
  0x8b   : > { %372 = vmatprep.subr.bf16.mxu0 %v353_v35  ;;  %v466_v50 = vmul.f32 %v1322_v37, %v457_v42  ;;  %v467_v51 = vmul.f32 %v1325_v38, %v456_v41 }
  0x8c   : > { %373 = vmatpush1.bf16.msra.mxu0 %v352_v36 }
  0x8d   : > { %v471_v44 = vpop.permute.xlu1 %470  ;;  %v469_v45 = vpop.permute.xlu0 %468 }
  0x8e   : > { %v473_v46 = vsel %vm472_vm5, %v469_v45, %v471_v44  ;;  %v474_v47 = vsel %vm472_vm5, %v471_v44, %v469_v45  ;;  %v1111_v44 = vld [vmem:[%s1525_s2 + $0xc] sm:$0xf] }
  0x8f   : > { %v483_v52 = vmul.f32 %v1328_v39, %v474_v47  ;;  %v484_v53 = vmul.f32 %v1331_v40, %v473_v46  ;;  %1104 = vmatmul.mubr.msk.bf16.vlgmr.msra.gmra.mxu0 %vm354_vm6, %v351_v43 }
  0x90   : > { %524 = vmatprep.mubr.bf16.mxu0 %v1154_v2 }
  0x91   : > { %v487_v54 = vpack.c.bf16 %v483_v52, %v466_v50  ;;  %v538_v55 = vpop.permute.xlu1 %537  ;;  %v536_v56 = vpop.permute.xlu0 %535  ;;  %v488_v57 = vpack.c.bf16 %v484_v53, %v467_v51 }
  0x92   : > { %v540_v62 = vsel %vm539_vm7, %v536_v56, %v538_v55  ;;  %v541_v63 = vsel %vm539_vm7, %v538_v55, %v536_v56 }
  0x93   : > { %506 = vmatprep.subr.bf16.mxu0 %v488_v57  ;;  %v550_v12 = vmul.f32 %v1354_v58, %v540_v62  ;;  %v551_v15 = vmul.f32 %v1357_v59, %v541_v63 }
  0x94   : > { %507 = vmatpush1.bf16.msra.mxu0 %v487_v54 }
  0x95   : > { %v555_v4 = vpop.permute.xlu1 %554  ;;  %v553_v5 = vpop.permute.xlu0 %552 }
  0x96   : > { %v557_v6 = vsel %vm556_vm8, %v553_v5, %v555_v4  ;;  %v558_v7 = vsel %vm556_vm8, %v555_v4, %v553_v5 }
  0x97   : > { %v567_v16 = vmul.f32 %v1361_v60, %v557_v6  ;;  %v568_v21 = vmul.f32 %v1364_v61, %v558_v7  ;;  %1108 = vmatmul.mubr.msk.bf16.vlgmr.msra.gmra.mxu0 %vm354_vm6, %v1107_v3 }
  0x98   : > { %692 = vmatprep.mubr.bf16.mxu0 %v1154_v2 }
  0x99   : > { %v571_v22 = vpack.c.bf16 %v567_v16, %v550_v12  ;;  %v622_v23 = vpop.permute.xlu1 %621  ;;  %v620_v24 = vpop.permute.xlu0 %619  ;;  %v572_v25 = vpack.c.bf16 %v568_v21, %v551_v15 }
  0x9a   : > { %v624_v29 = vsel %vm623_vm9, %v620_v24, %v622_v23  ;;  %v625_v30 = vsel %vm623_vm9, %v622_v23, %v620_v24 }
  0x9b   : > { %590 = vmatprep.subr.bf16.mxu1 %v572_v25  ;;  %v634_v34 = vmul.f32 %v1387_v9, %v624_v29  ;;  %v635_v35 = vmul.f32 %v1390_v26, %v625_v30 }
  0x9c   : > { %591 = vmatpush1.bf16.msra.mxu1 %v571_v22 }
  0x9d   : > { %v639_v32 = vpop.permute.xlu1 %638  ;;  %v637_v33 = vpop.permute.xlu0 %636 }
  0x9e   : > { %v641_v13 = vsel %vm640_vm10, %v637_v33, %v639_v32  ;;  %v642_v14 = vsel %vm640_vm10, %v639_v32, %v637_v33 }
  0x9f   : > { %v651_v36 = vmul.f32 %v1394_v27, %v641_v13  ;;  %v652_v41 = vmul.f32 %v1397_v28, %v642_v14  ;;  %1110 = vmatmul.mubr.msk.bf16.vlgmr.msra.gmra.mxu1 %vm354_vm6, %v1109_v31  ;;  %v713_v14 = vld [vmem:[%s1529_s6] sm:$0xf] }
  0xa0   : > { %770 = vmatprep.mubr.bf16.mxu1 %v1154_v2 }
  0xa1   : > { %v655_v42 = vpack.c.bf16 %v651_v36, %v634_v34  ;;  %v656_v43 = vpack.c.bf16 %v652_v41, %v635_v35  ;;  %v712_v34 = vld [vmem:[%s1530_s7] sm:$0xff] }
  0xa3   : > { %674 = vmatprep.subr.bf16.mxu0 %v656_v43 }
  0xa4   : > { %675 = vmatpush1.bf16.msra.mxu0 %v655_v42 }
  0xa7   : > { %1112 = vmatmul.mubr.msk.bf16.vlgmr.msra.gmra.mxu0 %vm354_vm6, %v1111_v44 }
  0xa8   : > { %820 = vmatprep.mubr.bf16.mxu0 %v1154_v2 }
  0xaa   : > { %v706_v12 = vpop.permute.xlu0 %705 }
  0xd5   : > { %v444_v45 = vpop.f32.mrf.mxu1 }
  0xd7   : > { %v446_v46 = vpop.f32.mrf.mxu1 }
  0xd9   : > { %v448_v47 = vpop.f32.mrf.mxu1 }
  0xdb   : > { %v449_v48 = vpop.f32.mrf.mxu1 }
 0x14f   : > { %v392_v49 = vpop.f32.mrf.mxu0 }
 0x150   : > { %v445_v62 = vadd.f32 %v444_v45, %v392_v49 }
 0x151   : > { %v394_v50 = vpop.f32.mrf.mxu0 }
 0x152   : > { %v447_v3 = vadd.f32 %v446_v46, %v394_v50 }
 0x153   : > { %v396_v51 = vpop.f32.mrf.mxu0 }
 0x155   : > { %v397_v52 = vpop.f32.mrf.mxu0 }
 0x157   : > { %v526_v53 = vpop.f32.mrf.mxu0 }
 0x158   : > { %v533_v5 = vadd.f32 %v526_v53, %v445_v62 }
 0x159   : > { %v528_v54 = vpop.f32.mrf.mxu0 }
 0x15a   : > { %v534_v7 = vadd.f32 %v528_v54, %v447_v3 }
 0x15b   : > { %v530_v55 = vpop.f32.mrf.mxu0 }
 0x15d   : > { %v531_v56 = vpop.f32.mrf.mxu0 }
 0x15f   : > { %v610_v57 = vpop.f32.mrf.mxu1 }
 0x160   : > { %v617_v8 = vadd.f32 %v610_v57, %v533_v5 }
 0x161   : > { %v612_v63 = vpop.f32.mrf.mxu1 }
 0x162   : > { %v618_v15 = vadd.f32 %v612_v63, %v534_v7 }
 0x163   : > { %v614_v4 = vpop.f32.mrf.mxu1 }
 0x165   : > { %v615_v6 = vpop.f32.mrf.mxu1 }
 0x167   : > { %v694_v11 = vpop.f32.mrf.mxu0 }
 0x168   : > { %v701_v16 = vadd.f32 %v694_v11, %v617_v8 }
 0x169   : > { %v696_v21 = vpop.f32.mrf.mxu0 }
 0x16a   : > { %v702_v22 = vadd.f32 %v696_v21, %v618_v15  ;;  %v708_v23 = vadd.f32 %v706_v12, %v701_v16 }
 0x16b   : > { %v698_v24 = vpop.f32.mrf.mxu0 }
 0x16c   : > { %v709_v25 = vadd.f32 %v706_v12, %v702_v22  ;;  %v710_v29 = vmax.f32 %v708_v23, 0.0 }
 0x16d   : > { %v699_v30 = vpop.f32.mrf.mxu0 }
 0x16e   : > { %v711_v31 = vmax.f32 %v709_v25, 0.0  ;;  %724 = vrot.lane.b32.xlu0 %v710_v29, %s1152_s11  ;;  %716 = vrot.lane.b32.xlu1 %v710_v29, %s1153_s12  ;;  %v714_v32 = vpack.c.bf16 %v710_v29, %v710_v29 }
 0x170   : > { %v715_v33 = vpack.c.bf16 %v711_v31, %v711_v31  ;;  %v783_v13 = vsel %vm403_vm0, %v714_v32, 0 }
 0x172   : > { %1114 = vmatprep.subr.msk.bf16.mxu0 %vm403_vm0, %v715_v33  ;;  %829 = vrot.lane.b32.xlu0 %v710_v29, %s1155_s15 }
 0x173   : > { %718 = vrot.lane.b32.xlu1 %v711_v31, %s1153_s12  ;;  %803 = vmatpush1.bf16.msra.mxu0 %v783_v13 }
 0x176   : > { %837 = vrot.lane.b32.xlu0 %v710_v29, %s1156_s16  ;;  %1115 = vmatmul.mubr.msk.bf16.vlgmr.msra.gmra.mxu0 %vm399_vm1, %v713_v14 }
 0x177   : > { %726 = vrot.lane.b32.xlu1 %v711_v31, %s1152_s11  ;;  %950 = vmatprep.mubr.bf16.mxu0 %v1154_v2 }
 0x17a   : > { %895 = vrot.lane.b32.xlu0 %v710_v29, %s1157_s17 }
 0x17b   : > { %831 = vrot.lane.b32.xlu1 %v711_v31, %s1155_s15 }
 0x17e   : > { %903 = vrot.lane.b32.xlu0 %v710_v29, %s1158_s18 }
 0x17f   : > { %839 = vrot.lane.b32.xlu1 %v711_v31, %s1156_s16 }
 0x182   : > { %961 = vrot.lane.b32.xlu0 %v710_v29, %s1159_s19 }
 0x183   : > { %897 = vrot.lane.b32.xlu1 %v711_v31, %s1157_s17 }
 0x186   : > { %969 = vrot.lane.b32.xlu0 %v710_v29, %s1160_s20 }
 0x187   : > { %905 = vrot.lane.b32.xlu1 %v711_v31, %s1158_s18 }
 0x18a   : > { %1029 = vperm.xlu0 %1143, %v712_v34  }
 0x18b   : > { %963 = vrot.lane.b32.xlu1 %v711_v31, %s1159_s19 }
 0x18f   : > { %971 = vrot.lane.b32.xlu1 %v711_v31, %s1160_s20 }
 0x1e0   : > { %v725_v35 = vpop.permute.xlu0 %724  ;;  %v717_v36 = vpop.permute.xlu1 %716 }
 0x1e4   : > { %v830_v41 = vpop.permute.xlu0 %829 }
 0x1e5   : > { %v719_v42 = vpop.permute.xlu1 %718 }
 0x1e6   : > { %v720_v43 = vsel %vm321_vm3, %v717_v36, %v719_v42  ;;  %v721_v44 = vsel %vm321_vm3, %v719_v42, %v717_v36 }
 0x1e7   : > { %v722_v49 = vmul.f32 %v721_v44, %v1297_v18  ;;  %v723_v50 = vmul.f32 %v720_v43, %v1300_v19  ;;  %v732_v18 = vld [vmem:[%s1528_s5] sm:$0xf] }
 0x1e8   : > { %v838_v45 = vpop.permute.xlu0 %837 }
 0x1e9   : > { %v727_v46 = vpop.permute.xlu1 %726 }
 0x1ea   : > { %v728_v47 = vsel %vm338_vm2, %v725_v35, %v727_v46  ;;  %v729_v48 = vsel %vm338_vm2, %v727_v46, %v725_v35 }
 0x1eb   : > { %v730_v51 = vmul.f32 %v729_v48, %v1294_v17  ;;  %v731_v52 = vmul.f32 %v728_v47, %v1303_v20 }
 0x1ec   : > { %v896_v56 = vpop.permute.xlu0 %895 }
 0x1ed   : > { %v733_v53 = vpack.c.bf16 %v730_v51, %v722_v49  ;;  %v832_v54 = vpop.permute.xlu1 %831  ;;  %v734_v55 = vpack.c.bf16 %v731_v52, %v723_v50 }
 0x1ee   : > { %v833_v57 = vsel %vm455_vm4, %v830_v41, %v832_v54  ;;  %v834_v62 = vsel %vm455_vm4, %v832_v54, %v830_v41  ;;  %v1120_v41 = vld [vmem:[%s1528_s5 + $0xc] sm:$0xf] }
 0x1ef   : > { %752 = vmatprep.subr.bf16.mxu1 %v734_v55  ;;  %v835_v63 = vmul.f32 %v834_v62, %v1322_v37  ;;  %v836_v3 = vmul.f32 %v833_v57, %v1325_v38  ;;  %v1116_v38 = vld [vmem:[%s1528_s5 + $0x4] sm:$0xf] }
 0x1f0   : > { %753 = vmatpush1.bf16.msra.mxu1 %v733_v53  ;;  %v904_v6 = vpop.permute.xlu0 %903 }
 0x1f1   : > { %v840_v19 = vpop.permute.xlu1 %839 }
 0x1f2   : > { %v841_v17 = vsel %vm472_vm5, %v838_v45, %v840_v19  ;;  %v842_v20 = vsel %vm472_vm5, %v840_v19, %v838_v45 }
 0x1f3   : > { %v843_v4 = vmul.f32 %v842_v20, %v1328_v39  ;;  %v844_v5 = vmul.f32 %v841_v17, %v1331_v40  ;;  %1113 = vmatmul.mubr.msk.bf16.vlgmr.msra.gmra.mxu1 %vm354_vm6, %v732_v18 }
 0x1f4   : > { %884 = vmatprep.mubr.bf16.mxu1 %v1154_v2  ;;  %v962_v16 = vpop.permute.xlu0 %961 }
 0x1f5   : > { %v847_v7 = vpack.c.bf16 %v843_v4, %v835_v63  ;;  %v898_v8 = vpop.permute.xlu1 %897  ;;  %v848_v11 = vpack.c.bf16 %v844_v5, %v836_v3 }
 0x1f6   : > { %v899_v12 = vsel %vm539_vm7, %v896_v56, %v898_v8  ;;  %v900_v37 = vsel %vm539_vm7, %v898_v8, %v896_v56 }
 0x1f7   : > { %866 = vmatprep.subr.bf16.mxu1 %v848_v11  ;;  %v901_v21 = vmul.f32 %v899_v12, %v1354_v58  ;;  %v902_v22 = vmul.f32 %v900_v37, %v1357_v59  ;;  %v1118_v59 = vld [vmem:[%s1528_s5 + $0x8] sm:$0xf] }
 0x1f8   : > { %867 = vmatpush1.bf16.msra.mxu1 %v847_v7 }
 0x1f9   : > { %v906_v39 = vpop.permute.xlu1 %905 }
 0x1fa   : > { %v907_v40 = vsel %vm556_vm8, %v904_v6, %v906_v39  ;;  %v908_v15 = vsel %vm556_vm8, %v906_v39, %v904_v6 }
 0x1fb   : > { %v909_v23 = vmul.f32 %v907_v40, %v1361_v60  ;;  %v910_v24 = vmul.f32 %v908_v15, %v1364_v61  ;;  %1117 = vmatmul.mubr.msk.bf16.vlgmr.msra.gmra.mxu1 %vm354_vm6, %v1116_v38  ;;  %v970_v60 = vpop.permute.xlu0 %969 }
 0x1fc   : > { %1016 = vmatprep.mubr.bf16.mxu1 %v1154_v2 }
 0x1fd   : > { %v913_v25 = vpack.c.bf16 %v909_v23, %v901_v21  ;;  %v964_v29 = vpop.permute.xlu1 %963  ;;  %v914_v30 = vpack.c.bf16 %v910_v24, %v902_v22 }
 0x1fe   : > { %v965_v31 = vsel %vm623_vm9, %v962_v16, %v964_v29  ;;  %v966_v58 = vsel %vm623_vm9, %v964_v29, %v962_v16 }
 0x1ff   : > { %932 = vmatprep.subr.bf16.mxu0 %v914_v30  ;;  %v967_v33 = vmul.f32 %v965_v31, %v1387_v9  ;;  %v968_v13 = vmul.f32 %v966_v58, %v1390_v26 }
 0x200   : > { %933 = vmatpush1.bf16.msra.mxu0 %v913_v25 }
 0x201   : > { %v972_v61 = vpop.permute.xlu1 %971 }
 0x202   : > { %v973_v2 = vsel %vm640_vm10, %v970_v60, %v972_v61  ;;  %v974_v32 = vsel %vm640_vm10, %v972_v61, %v970_v60 }
 0x203   : > { %v975_v14 = vmul.f32 %v973_v2, %v1394_v27  ;;  %v976_v34 = vmul.f32 %v974_v32, %v1397_v28  ;;  %1119 = vmatmul.mubr.msk.bf16.vlgmr.msra.gmra.mxu0 %vm354_vm6, %v1118_v59 }
 0x205   : > { %v979_v35 = vpack.c.bf16 %v975_v14, %v967_v33  ;;  %v980_v36 = vpack.c.bf16 %v976_v34, %v968_v13  ;;  %v1030_v17 = vpop.permute.xlu0 %1029 }
 0x207   : > { %998 = vmatprep.subr.bf16.mxu1 %v980_v36 }
 0x208   : > { %999 = vmatpush1.bf16.msra.mxu1 %v979_v35 }
 0x20b   : > { %1121 = vmatmul.mubr.msk.bf16.vlgmr.msra.gmra.mxu1 %vm354_vm6, %v1120_v41 }
 0x236   : > { %v822_v10 = vpop.f32.mrf.mxu0 }
 0x238   : > { %v824_v9 = vpop.f32.mrf.mxu0 }
 0x23a   : > { %v826_v42 = vpop.f32.mrf.mxu0 }
 0x23c   : > { %v827_v26 = vpop.f32.mrf.mxu0 }
 0x2b3   : > { %v772_v43 = vpop.f32.mrf.mxu1 }
 0x2b4   : > { %v823_v50 = vadd.f32 %v822_v10, %v772_v43 }
 0x2b5   : > { %v774_v27 = vpop.f32.mrf.mxu1 }
 0x2b6   : > { %v825_v52 = vadd.f32 %v824_v9, %v774_v27 }
 0x2b7   : > { %v776_v44 = vpop.f32.mrf.mxu1 }
 0x2b9   : > { %v777_v28 = vpop.f32.mrf.mxu1 }
 0x2bb   : > { %v886_v45 = vpop.f32.mrf.mxu1 }
 0x2bc   : > { %v893_v54 = vadd.f32 %v886_v45, %v823_v50 }
 0x2bd   : > { %v888_v46 = vpop.f32.mrf.mxu1 }
 0x2be   : > { %v894_v56 = vadd.f32 %v888_v46, %v825_v52 }
 0x2bf   : > { %v890_v47 = vpop.f32.mrf.mxu1 }
 0x2c1   : > { %v891_v48 = vpop.f32.mrf.mxu1 }
 0x2c3   : > { %v952_v49 = vpop.f32.mrf.mxu0 }
 0x2c4   : > { %v959_v57 = vadd.f32 %v952_v49, %v893_v54 }
 0x2c5   : > { %v954_v51 = vpop.f32.mrf.mxu0 }
 0x2c6   : > { %v960_v18 = vadd.f32 %v954_v51, %v894_v56 }
 0x2c7   : > { %v956_v53 = vpop.f32.mrf.mxu0 }
 0x2c9   : > { %v957_v55 = vpop.f32.mrf.mxu0 }
 0x2cb   : > { %v1018_v62 = vpop.f32.mrf.mxu1 }
 0x2cc   : > { %v1025_v19 = vadd.f32 %v1018_v62, %v959_v57 }
 0x2cd   : > { %v1020_v20 = vpop.f32.mrf.mxu1 }
 0x2ce   : > { %v1032_v63 = vadd.f32 %v1030_v17, %v1025_v19  ;;  %v1026_v3 = vadd.f32 %v1020_v20, %v960_v18 }
 0x2cf   : > { %v1022_v4 = vpop.f32.mrf.mxu1 }
 0x2d0   : > { %v1034_v5 = vadd.f32 %v1032_v63, %v1222_v0  ;;  %v1033_v6 = vadd.f32 %v1030_v17, %v1026_v3 }
 0x2d1   : > { %v1023_v7 = vpop.f32.mrf.mxu1 }
 0x2d2   : > { %v1036_v8 = vmax.f32 %v1034_v5, 0.0  ;;  %v1035_v11 = vadd.f32 %v1033_v6, %v1228_v1 }
 0x2d4   : > { %1038 = vst [vmem:[%s305_s13] sm:$0xff] %v1036_v8  ;;  %v1037_v12 = vmax.f32 %v1035_v11, 0.0 }
 0x2d6   : > { %1039 = vst [vmem:[%s305_s13 + $0x8] sm:$0xff] %v1037_v12 }
 0x2d7 PF: > { %s18_s27 = sadd.s32 1, %s1150_s27  }
 0x2d8   : > { %p15_p4 = scmp.ge.s32.totalorder %s18_s27, 4  }
 0x2da   :  { %17 = sbr.rel (!%p15_p4) target bundleno = 1 (0x1), region = 88 }

</bundles_post_ra>
